<compile_context>
chip_gen: v7x
topology: tpu7x:2x2x1
jax: 0.10.0
libtpu: 0.0.40
codegen_flags: <defaults>
</compile_context>

<pallas_src>
import functools

import jax
import jax.numpy as jnp
from jax.experimental import pallas as pl
from jax.experimental.pallas import tpu as pltpu

LANES = 128
SUBLANES = 8
NUM_CORES = 2  # leading "parallel" grid axis: both TCs on v7x, no-op elsewhere


def _round_up(x, m):
    return (x + m - 1) // m * m


def _rmse_partial_kernel(yhat_ref, y_ref, partial_ref, *, valid_rows):
    c = pl.program_id(0)           # parallel (core) axis
    i = pl.program_id(1)           # arbitrary (streaming) axis
    n_inner = pl.num_programs(1)

    @pl.when(i == 0)
    def _init():
        partial_ref[...] = jnp.zeros((SUBLANES, LANES), jnp.float32)

    tile_rows = yhat_ref.shape[0]
    # Logical global row of each element of this block (independent of any
    # index clamping the wrapper's index_map may do for out-of-range blocks).
    row0 = (c * n_inner + i) * tile_rows
    row_ids = row0 + jax.lax.broadcasted_iota(jnp.int32, (tile_rows, LANES), 0)
    mask = row_ids < valid_rows

    diff = yhat_ref[...].astype(jnp.float32) - y_ref[...].astype(jnp.float32)
    # Select 0 BEFORE squaring so garbage (possibly NaN) padding never leaks.
    diff = jnp.where(mask, diff, jnp.float32(0.0))
    sq = diff * diff

    # Fold (tile_rows, 128) -> (8, 128) with VPU adds into the per-core
    # accumulator that lives in the output block (revisited across i).
    partial_ref[...] += jnp.sum(
        sq.reshape(tile_rows // SUBLANES, SUBLANES, LANES), axis=0)


def rmse_loss(yhat, y, *, tile_rows=2048):
    assert yhat.shape == y.shape, "yhat and y must have the same shape"
    total_n = yhat.size

    # Flatten in native dtype (kernel casts to f32 for the accumulate).
    yhat_flat = jnp.ravel(yhat)
    y_flat = jnp.ravel(y)

    # Tiny pad (< 128 elems) only when not lane-aligned; pad is zero in BOTH
    # inputs so it contributes 0 to the sum of squares.
    pad = (-total_n) % LANES
    if pad:
        yhat_flat = jnp.pad(yhat_flat, (0, pad))
        y_flat = jnp.pad(y_flat, (0, pad))
    rows = (total_n + pad) // LANES

    # Clamp the tile so tiny inputs don't stream huge mostly-masked blocks;
    # keep it a multiple of 32 (sublane packing for f32/bf16/int8).
    tile_rows = max(32, min(_round_up(int(tile_rows), 32), _round_up(rows, 32)))

    yhat2d = yhat_flat.reshape(rows, LANES)
    y2d = y_flat.reshape(rows, LANES)

    n_blocks = pl.cdiv(rows, tile_rows)
    n_inner = pl.cdiv(n_blocks, NUM_CORES)
    grid = (NUM_CORES, n_inner)

    def in_index_map(c, i):
        # Clamp fully out-of-range block indices (odd n_blocks / tiny inputs)
        # to the last valid block; their rows are masked to zero in-kernel.
        return (jnp.minimum(c * n_inner + i, n_blocks - 1), 0)

    itemsize = max(jnp.dtype(yhat.dtype).itemsize, jnp.dtype(y.dtype).itemsize)
    block_bytes = tile_rows * LANES * itemsize
    # 2 inputs x 2 buffers x block + headroom; safe on v5e/v6e/v7x defaults.
    vmem_limit = int(min(64 * 1024 * 1024, max(16 * 1024 * 1024, 8 * block_bytes)))

    bytes_accessed = (yhat_flat.size * jnp.dtype(yhat.dtype).itemsize
                      + y_flat.size * jnp.dtype(y.dtype).itemsize)

    partials = pl.pallas_call(
        functools.partial(_rmse_partial_kernel, valid_rows=rows),
        out_shape=jax.ShapeDtypeStruct((NUM_CORES, SUBLANES, LANES), jnp.float32),
        grid_spec=pltpu.PrefetchScalarGridSpec(
            num_scalar_prefetch=0,
            grid=grid,
            in_specs=[
                pl.BlockSpec((tile_rows, LANES), in_index_map),
                pl.BlockSpec((tile_rows, LANES), in_index_map),
            ],
            out_specs=pl.BlockSpec((None, SUBLANES, LANES), lambda c, i: (c, 0, 0)),
        ),
        compiler_params=pltpu.CompilerParams(
            dimension_semantics=("parallel", "arbitrary"),
            vmem_limit_bytes=vmem_limit,
        ),
        cost_estimate=pl.CostEstimate(
            flops=3 * total_n, transcendentals=0, bytes_accessed=bytes_accessed),
    )(yhat2d, y2d)

    # Final combine across cores + lanes, then mean over the TRUE element
    # count and sqrt (matches torch.sqrt(F.mse_loss(yhat, y))).
    return jnp.sqrt(jnp.sum(partials) / jnp.float32(total_n))


if __name__ == "__main__":
    key = jax.random.PRNGKey(0)
    k1, k2 = jax.random.split(key)
    # Small NCHW-shaped predictions / targets.
    yhat = jax.random.normal(k1, (2, 4, 16, 16), dtype=jnp.float32)
    y = jax.random.normal(k2, (2, 4, 16, 16), dtype=jnp.float32)

    out = rmse_loss(yhat, y)
    jax.block_until_ready(out)

    # Cross-check against plain JAX (torch.sqrt(F.mse_loss(yhat, y))).
    ref = jnp.sqrt(jnp.mean((yhat - y) ** 2))
    assert jnp.allclose(out, ref, rtol=1e-5, atol=1e-6), (out, ref)

    print("KERNEL_OK")
</pallas_src>

<mosaic_0001>
module attributes {stable_mosaic.version = 11 : i64} {
  func.func @_rmse_partial_kernel(%arg0: i32, %arg1: i32, %arg2: memref<32x128xf32, #tpu.memory_space<vmem>>, %arg3: memref<32x128xf32, #tpu.memory_space<vmem>>, %arg4: memref<1x8x128xf32, #tpu.memory_space<vmem>>) attributes {dimension_semantics = [#tpu.dimension_semantics<parallel>, #tpu.dimension_semantics<arbitrary>], iteration_bounds = array<i64: 2, 1>, scalar_prefetch = 0 : i64, scratch_operands = 0 : i64, tpu.core_type = #tpu.core_type<tc>, window_params = [{transform_indices = @transform_0, window_bounds = array<i64: 32, 128>}, {transform_indices = @transform_1, window_bounds = array<i64: 32, 128>}, {transform_indices = @transform_2, window_bounds = array<i64: 1, 8, 128>}]} {
    %c0_i32 = arith.constant 0 : i32
    %0 = arith.cmpi eq, %arg1, %c0_i32 : i32
    %1 = arith.extui %0 : i1 to i32
    %c0_i32_0 = arith.constant 0 : i32
    %2 = arith.cmpi ne, %1, %c0_i32_0 : i32
    scf.if %2 {
      %cst_11 = arith.constant 0.000000e+00 : f32
      %25 = vector.broadcast %cst_11 : f32 to vector<8x128xf32>
      %c0_12 = arith.constant 0 : index
      %c0_13 = arith.constant 0 : index
      %c0_14 = arith.constant 0 : index
      %26 = vector.load %arg4[%c0_12, %c0_13, %c0_14] : memref<1x8x128xf32, #tpu.memory_space<vmem>>, vector<1x8x128xf32>
      %27 = vector.shape_cast %26 : vector<1x8x128xf32> to vector<8x128xf32>
      %28 = vector.shape_cast %25 : vector<8x128xf32> to vector<1x8x128xf32>
      tpu.vector_store %arg4[%c0_12, %c0_13, %c0_14], %28 {strides = array<i32>} : memref<1x8x128xf32, #tpu.memory_space<vmem>>, vector<1x8x128xf32>,
    } else {
    }
    %c1_i32 = arith.constant 1 : i32
    %3 = arith.muli %arg0, %c1_i32 : i32
    %4 = arith.addi %3, %arg1 : i32
    %c32_i32 = arith.constant 32 : i32
    %5 = arith.muli %4, %c32_i32 : i32
    %6 = tpu.iota {dimensions = array<i32: 0>} : vector<32x128xi32>
    %7 = vector.broadcast %5 : i32 to vector<32x128xi32>
    %8 = arith.addi %7, %6 : vector<32x128xi32>
    %c16_i32 = arith.constant 16 : i32
    %9 = vector.broadcast %c16_i32 : i32 to vector<32x128xi32>
    %10 = arith.cmpi slt, %8, %9 : vector<32x128xi32>
    %c0 = arith.constant 0 : index
    %c0_1 = arith.constant 0 : index
    %11 = vector.load %arg2[%c0, %c0_1] : memref<32x128xf32, #tpu.memory_space<vmem>>, vector<32x128xf32>
    %c0_2 = arith.constant 0 : index
    %c0_3 = arith.constant 0 : index
    %12 = vector.load %arg3[%c0_2, %c0_3] : memref<32x128xf32, #tpu.memory_space<vmem>>, vector<32x128xf32>
    %13 = arith.subf %11, %12 : vector<32x128xf32>
    %cst = arith.constant 0.000000e+00 : f32
    %14 = vector.broadcast %cst : f32 to vector<32x128xf32>
    %15 = arith.select %10, %13, %14 : vector<32x128xi1>, vector<32x128xf32>
    %16 = arith.mulf %15, %15 : vector<32x128xf32>
    %c0_4 = arith.constant 0 : index
    %c0_5 = arith.constant 0 : index
    %c0_6 = arith.constant 0 : index
    %17 = vector.load %arg4[%c0_4, %c0_5, %c0_6] : memref<1x8x128xf32, #tpu.memory_space<vmem>>, vector<1x8x128xf32>
    %18 = vector.shape_cast %17 : vector<1x8x128xf32> to vector<8x128xf32>
    %19 = vector.shape_cast %16 : vector<32x128xf32> to vector<4x8x128xf32>
    %cst_7 = arith.constant dense<0.000000e+00> : vector<8x128xf32>
    %20 = vector.multi_reduction <add>, %19, %cst_7 [0] : vector<4x8x128xf32> to vector<8x128xf32>
    %21 = arith.addf %18, %20 : vector<8x128xf32>
    %c0_8 = arith.constant 0 : index
    %c0_9 = arith.constant 0 : index
    %c0_10 = arith.constant 0 : index
    %22 = vector.load %arg4[%c0_8, %c0_9, %c0_10] : memref<1x8x128xf32, #tpu.memory_space<vmem>>, vector<1x8x128xf32>
    %23 = vector.shape_cast %22 : vector<1x8x128xf32> to vector<8x128xf32>
    %24 = vector.shape_cast %21 : vector<8x128xf32> to vector<1x8x128xf32>
    tpu.vector_store %arg4[%c0_8, %c0_9, %c0_10], %24 {strides = array<i32>} : memref<1x8x128xf32, #tpu.memory_space<vmem>>, vector<1x8x128xf32>,
    return
  }
  func.func @transform_0(%arg0: i32, %arg1: i32) -> (i32, i32) {
    %c1_i32 = arith.constant 1 : i32
    %0 = arith.muli %arg0, %c1_i32 : i32
    %1 = arith.addi %0, %arg1 : i32
    %c0_i32 = arith.constant 0 : i32
    %2 = arith.minsi %1, %c0_i32 : i32
    %c0_i32_0 = arith.constant 0 : i32
    %c0_i32_1 = arith.constant 0 : i32
    return %2, %c0_i32_0 : i32, i32
  }
  func.func @transform_1(%arg0: i32, %arg1: i32) -> (i32, i32) {
    %c1_i32 = arith.constant 1 : i32
    %0 = arith.muli %arg0, %c1_i32 : i32
    %1 = arith.addi %0, %arg1 : i32
    %c0_i32 = arith.constant 0 : i32
    %2 = arith.minsi %1, %c0_i32 : i32
    %c0_i32_0 = arith.constant 0 : i32
    %c0_i32_1 = arith.constant 0 : i32
    return %2, %c0_i32_0 : i32, i32
  }
  func.func @transform_2(%arg0: i32, %arg1: i32) -> (i32, i32, i32) {
    %c0_i32 = arith.constant 0 : i32
    %c0_i32_0 = arith.constant 0 : i32
    %c0_i32_1 = arith.constant 0 : i32
    return %arg0, %c0_i32, %c0_i32_0 : i32, i32, i32
  }
}

</mosaic_0001>

<bundles_post_ra>
// kernel: tpu_custom_call.1
= control target key start
LH: loop header
LB: loop body
LE: loop exit
PB: predicated region body
PF: predicated region fallthrough
CT: control target
= control target key end

     0   :  { %7 = vsyncpa [#allocation3], 0  ;;  %s897_s0 = inlined_call_operand.hbm [shape: f32[16,128], index: 0, kind: input, shape index: {}]   ;;  %s898_s1 = inlined_call_operand.hbm [shape: f32[16,128], index: 1, kind: input, shape index: {}]   ;;  %s899_s2 = inlined_call_operand.hbm [shape: f32[2,8,128], index: 2, kind: output, shape index: {}]  }
   0x1   :  { %9 = vsyncpa [#allocation3 + $0x1], 0 }
   0x2   :  { %10 = vsyncpa [#allocation6], 0 }
   0x3   :  { %12 = vsyncpa [#allocation6 + $0x1], 0 }
   0x4   :  { %13 = vsyncpa [#allocation4], 0 }
   0x5   :  { %15 = vsyncpa [#allocation4 + $0x1], 0  ;;  %s720_s9 = smov 0   ;;  %s722_s10 = smov 0  }
   0x6   :  { %s724_s11 = smov 0   ;;  %s726_s12 = smov 0  }
   0x7   :  { %s728_s13 = smov 0   ;;  %s730_s14 = smov 0  }
   0x8   :  { %s732_s15 = smov 0   ;;  %s734_s16 = smov 0  }
   0x9 LB: > { %s414_s17 = sadd.s32 4294967295, %s696_s16   ;;  %s415_s18 = sadd.s32 4294967294, %s696_s16   ;;  %s696_s16 = sphi %s734_s16, %s21_s16   ;;  %s692_s15 = sphi %s732_s15, %s911_s15   ;;  %s688_s14 = sphi %s730_s14, %s910_s14   ;;  %s684_s13 = sphi %s728_s13, %s887_s13   ;;  %s680_s12 = sphi %s726_s12, %s909_s12   ;;  %s676_s11 = sphi %s724_s11, %s908_s11   ;;  %s672_s10 = sphi %s722_s10, %s907_s10   ;;  %s668_s9 = sphi %s720_s9, %s906_s9  }
   0xa   : > { %s33_s19 = sadd.s32 1, %s692_s15  ;;  %p665_p1 = scmp.ne.s32.totalorder %s684_s13, 0 }
   0xb   : > { %p35_p0 = scmp.ge.s32.totalorder %s33_s19, 2  ;;  %p54_p2 = scmp.eq.s32.totalorder %s696_s16, 0 }
   0xc   : > { %p59_p3 = scmp.ne.s32.totalorder %s684_s13, %s680_s12  ;;  %p60_p5 = scmp.eq.s32.totalorder %s414_s17, 0 }
   0xd   : > { %s913_s19 = smov (%p35_p0, %s33_s19), 0  ;;  %p766_p4 = por %p665_p1, %p54_p2 }
   0xe   : > { %p770_p6 = por %p60_p5, %p59_p3  ;;  %s101_s22 = ssub.s32 %s692_s15, %s913_s19 }
   0xf   : > { %p102_p7 = scmp.eq.s32.totalorder %s101_s22, 0  ;;  %s104_s23 = sadd.s32 1, %s676_s11 }
  0x10   : > { %p114_p8 = scmp.ne.s32.totalorder %s676_s11, %s672_s10  ;;  %p115_p9 = scmp.eq.s32.totalorder %s414_s17, 1 }
  0x11   : > { %s778_s24 = scalar_select %p102_p7, %s676_s11, %s104_s23  }
  0x12   : > { %p120_p10 = scmp.ne.s32.totalorder %s672_s10, %s668_s9  ;;  %p121_p11 = scmp.eq.s32.totalorder %s415_s18, 1 }
  0x13   : > { %p784_p12 = por %p115_p9, %p114_p8  ;;  %p900_p0 = scmp.ge.s32.totalorder %s696_s16, 2 }
  0x14   : > { %p788_p13 = por %p121_p11, %p120_p10 }
  0x15   : > { %137 = sbr.rel (%p900_p0) target bundleno = 82 (0x52), region = 16 }
  0x1c   : > { %140 = sbr.rel (!%p766_p4) target bundleno = 55 (0x37), region = 20 }
  0x23   : > { %154 = vsyncadd [#allocation3], 256  ;;  %s698_s27 = smov [#allocation2]   ;;  %s529_s3 = scalar_lea.hbm %s897_s0, 256 }
  0x24   : > { %s159_s28 = sshll.u32 %s698_s27, 4  ;;  %p530_p1 = scmp.ne.s32.totalorder %s897_s0, %s529_s3  ;;  %s160_s28 = int_to_ptr.vmem [resolvable:$true] %s159_s28 }
  0x25   : > { %p535_p2 = scmp.lt.u32.totalorder %s529_s3, %s529_s3  ;;  %p537_p3 = scmp.lt.u32.totalorder %s529_s3, %s897_s0 }
  0x27   : > { %p538_p5 = por %p537_p3, %p535_p2 }
  0x29   : > { %p539_p7 = pnand %p538_p5, %p530_p1 }
  0x2b   : > { %542 = shalt.err (!%p539_p7)
}
  0x2c   : > { %s543_s8 = scalar_lea.vmem %s160_s28, 256  ;;  %s549_s12 = scalar_lea.vmem %s160_s28, 1024 }
  0x2d   : > { %p544_p8 = scmp.ne.s32.totalorder %s160_s28, %s543_s8  ;;  %p550_p9 = scmp.lt.s32.totalorder %s160_s28, %s160_s28 }
  0x2e   : > { %p551_p10 = scmp.lt.s32.totalorder %s549_s12, %s543_s8 }
  0x30   : > { %p552_p11 = por %p551_p10, %p550_p9 }
  0x32   : > { %p553_p0 = pnand %p552_p11, %p544_p8 }
  0x34   : > { %556 = shalt.err (!%p553_p0)
}
  0x35   : > { %s699_s17 = smov 128   ;;  %s700_s18 = smov 8  }
  0x36   : > { %165 = dma.hbm_to_vmem [thread:$0]  %s897_s0, 256, %s160_s28, [#allocation3], %s699_s17, %s699_s17, %s700_s18  }
  0x37 PF: > { %168 = sbr.rel (!%p766_p4) target bundleno = 82 (0x52), region = 24 }
  0x3e   : > { %182 = vsyncadd [#allocation6], 256  ;;  %s701_s27 = smov [#allocation5]   ;;  %s557_s4 = scalar_lea.hbm %s898_s1, 256 }
  0x3f   : > { %s187_s29 = sshll.u32 %s701_s27, 4  ;;  %p558_p0 = scmp.ne.s32.totalorder %s898_s1, %s557_s4  ;;  %s188_s29 = int_to_ptr.vmem [resolvable:$true] %s187_s29 }
  0x40   : > { %p563_p1 = scmp.lt.u32.totalorder %s557_s4, %s557_s4  ;;  %p565_p2 = scmp.lt.u32.totalorder %s557_s4, %s898_s1 }
  0x42   : > { %p566_p3 = por %p565_p2, %p563_p1 }
  0x44   : > { %p567_p5 = pnand %p566_p3, %p558_p0 }
  0x46   : > { %570 = shalt.err (!%p567_p5)
}
  0x47   : > { %s571_s20 = scalar_lea.vmem %s188_s29, 256  ;;  %s577_s28 = scalar_lea.vmem %s188_s29, 1024 }
  0x48   : > { %p572_p4 = scmp.ne.s32.totalorder %s188_s29, %s571_s20  ;;  %p578_p7 = scmp.lt.s32.totalorder %s188_s29, %s188_s29 }
  0x49   : > { %p579_p8 = scmp.lt.s32.totalorder %s577_s28, %s571_s20 }
  0x4b   : > { %p580_p9 = por %p579_p8, %p578_p7 }
  0x4d   : > { %p581_p10 = pnand %p580_p9, %p572_p4 }
  0x4f   : > { %584 = shalt.err (!%p581_p10)
}
  0x50   : > { %s702_s12 = smov 128   ;;  %s703_s17 = smov 8  }
  0x51   : > { %193 = dma.hbm_to_vmem [thread:$0]  %s898_s1, 256, %s188_s29, [#allocation6], %s702_s12, %s702_s12, %s703_s17  }
  0x52 PF: > { %p432_p11 = scmp.ge.s32.totalorder %s696_s16, 1  ;;  %p195_p0 = scmp.lt.s32.totalorder %s696_s16, 3 }
  0x54   : > { %p196_p1 = pnand %p432_p11, %p195_p0 }
  0x55   : > { %s201_s23 = sand.u32 (!%p196_p1), 1, %s684_s13  }
  0x56   : > { %199 = sbr.rel (%p196_p1) target bundleno = 128 (0x80), region = 28  ;;  %s433_s27 = sshll.u32 (!%p196_p1), %s201_s23, 5 }
  0x57   : > { %s202_s30 = scalar_lea.sflag (!%p196_p1), [#allocation3], %s201_s23  ;;  %s205_s3 = scalar_lea.vmem (!%p196_p1), [#allocation2], %s433_s27 }
  0x5d   : > { %650 = dma.done.wait (%p770_p6), %s202_s30, 512  }
  0x5e   : > { %652 = vsyncadd (%p770_p6), %s202_s30, 4294966784  ;;  %s211_s29 = scalar_lea.sflag [#allocation6], %s201_s23  ;;  %s214_s4 = scalar_lea.vmem [#allocation5], %s433_s27 }
  0x5f   : > { %654 = dma.done.wait (%p770_p6), %s211_s29, 512  }
  0x60   : > { %656 = vsyncadd (%p770_p6), %s211_s29, 4294966784  ;;  %s436_s5 = sshll.u32 %s688_s14, 5  ;;  %v259_v0 = vlaneseq  ;;  %v273_v10 = vld [vmem:[%s205_s3] sm:$0xff]  ;;  %v274_v11 = vld [vmem:[%s205_s3 + $0x8] sm:$0xff]  ;;  %s237_s6 = sand.u32 1, %s672_s10  }
  0x61   : > { %v264_v1 = vstv %s436_s5  ;;  %v275_v12 = vld [vmem:[%s205_s3 + $0x10] sm:$0xff]  ;;  %v276_v13 = vld [vmem:[%s205_s3 + $0x18] sm:$0xff]  ;;  %v277_v14 = vld [vmem:[%s214_s4] sm:$0xff]  ;;  %s435_s21 = sshll.u32 %s237_s6, 3  ;;  %s438_s7 = sshll.u32 %s688_s14, 7 }
  0x62   : > { %v260_v2 = vshrl.u32 %v259_v0, 7  ;;  %v278_v15 = vld [vmem:[%s214_s4 + $0x8] sm:$0xff]  ;;  %v279_v16 = vld [vmem:[%s214_s4 + $0x10] sm:$0xff]  ;;  %v280_v17 = vld [vmem:[%s214_s4 + $0x18] sm:$0xff]  ;;  %v281_v18 = vsub.f32 %v273_v10, %v277_v14  ;;  %s239_s8 = scalar_lea.vmem [#allocation7], %s435_s21  ;;  %s842_s17 = scalar_lea.hbm %s899_s2, %s438_s7 }
  0x63   : > { %v282_v19 = vsub.f32 %v274_v11, %v278_v15  ;;  %v283_v20 = vsub.f32 %v275_v12, %v279_v16  ;;  %v284_v21 = vsub.f32 %v276_v13, %v280_v17  ;;  %s313_s20 = sshll.u32 %s239_s8, 4  ;;  %s300_s18 = scalar_lea.sflag [#allocation4], %s237_s6  ;;  %s844_s20 = int_to_ptr.vmem [resolvable:$true] %s313_s20 }
  0x64   : > { %v261_v3 = vadd.s32 8, %v260_v2  ;;  %v262_v4 = vadd.s32 16, %v260_v2  ;;  %v263_v5 = vadd.s32 24, %v260_v2  ;;  %v265_v6 = vadd.s32 %v264_v1, %v260_v2  ;;  %s585_s22 = scalar_lea.vmem %s844_s20, 128  ;;  %s704_s14 = smov [#allocation7]  }
  0x65   : > { %p586_p6 = scmp.ne.s32.totalorder %s844_s20, %s585_s22  ;;  %s589_s23 = sshll.u32 %s704_s14, 4  ;;  %s590_s23 = int_to_ptr.vmem [resolvable:$false] %s589_s23 }
  0x66   : > { %v266_v7 = vadd.s32 %v264_v1, %v261_v3  ;;  %v267_v8 = vadd.s32 %v264_v1, %v262_v4  ;;  %v268_v9 = vadd.s32 %v264_v1, %v263_v5  ;;  %vm269_vm0 = vcmp.lt.s32.totalorder %v265_v6, 16  ;;  %s591_s27 = scalar_lea.vmem %s590_s23, 256  ;;  %p592_p5 = scmp.lt.s32.totalorder %s844_s20, %s590_s23 }
  0x67   : > { %v285_v22 = vsel %vm269_vm0, %v281_v18, 0.0  ;;  %p587_p2 = pnand %p586_p6, %p784_p12  ;;  %p593_p4 = scmp.lt.s32.totalorder %s591_s27, %s585_s22 }
  0x68   : > { %vm270_vm1 = vcmp.lt.s32.totalorder %v266_v7, 16  ;;  %vm271_vm2 = vcmp.lt.s32.totalorder %v267_v8, 16  ;;  %vm272_vm3 = vcmp.lt.s32.totalorder %v268_v9, 16  ;;  %v289_v26 = vmul.f32 %v285_v22, %v285_v22 }
  0x69   : > { %v286_v23 = vsel %vm270_vm1, %v282_v19, 0.0  ;;  %v287_v24 = vsel %vm271_vm2, %v283_v20, 0.0  ;;  %v288_v25 = vsel %vm272_vm3, %v284_v21, 0.0  ;;  %p588_p3 = pneg %p587_p2  ;;  %p594_p7 = por %p593_p4, %p592_p5 }
  0x6a   : > { %v290_v27 = vmul.f32 %v286_v23, %v286_v23  ;;  %v291_v28 = vmul.f32 %v287_v24, %v287_v24  ;;  %v292_v29 = vmul.f32 %v288_v25, %v288_v25 }
  0x6b   : > { %p595_p8 = pnand %p594_p7, %p588_p3 }
  0x6c   : > { %v294_v30 = vadd.f32 %v290_v27, %v289_v26 }
  0x6e   : > { %v295_v31 = vadd.f32 %v294_v30, %v291_v28 }
  0x70   : > { %v296_v32 = vadd.f32 %v295_v31, %v292_v29 }
  0x72   : > { %298 = vst [vmem:[%s239_s8] sm:$0xff] %v296_v32 }
  0x73   : > { %598 = shalt.err (!%p595_p8)
}
  0x74   : > { %s599_s30 = scalar_lea.hbm %s842_s17, 128  ;;  %s603_s4 = scalar_lea.hbm %s899_s2, 256 }
  0x75   : > { %p600_p9 = scmp.ne.s32.totalorder %s842_s17, %s599_s30  ;;  %p604_p0 = scmp.lt.u32.totalorder %s842_s17, %s899_s2 }
  0x76   : > { %p605_p1 = scmp.lt.u32.totalorder %s603_s4, %s599_s30  ;;  %p607_p2 = scmp.lt.u32.totalorder %s599_s30, %s842_s17 }
  0x77   : > { %p601_p10 = pnand %p600_p9, %p784_p12 }
  0x78   : > { %p606_p6 = por %p605_p1, %p604_p0 }
  0x79   : > { %p602_p11 = pneg %p601_p10 }
  0x7a   : > { %p608_p3 = por %p607_p2, %p606_p6 }
  0x7c   : > { %p609_p5 = pnand %p608_p3, %p602_p11 }
  0x7e   : > { %612 = shalt.err (!%p609_p5)
}
  0x7f   : > { %445 = dma.vmem_to_hbm [thread:$0]  (%p784_p12), %s844_s20, 128, %s842_s17, %s300_s18  }
  0x80 PF: > { %s325_s21 = sand.u32 1, %s668_s9   ;;  %p905_p4 = scmp.ge.s32.totalorder %s696_s16, 2 }
  0x81   : > { %s326_s7 = scalar_lea.sflag [#allocation4], %s325_s21 }
  0x82   : > { %p448_p7 = pnand %p905_p4, %p788_p13 }
  0x84   : > { %658 = dma.done.wait (!%p448_p7), %s326_s7, 128  }
  0x85   : > { %660 = vsyncadd (!%p448_p7), %s326_s7, 4294967168  ;;  %s21_s16 = sadd.s32 1, %s696_s16   ;;  %s906_s9 = smov %s672_s10 }
  0x86   : > { %p18_p8 = scmp.ge.s32.totalorder %s21_s16, 4   ;;  %s907_s10 = smov %s676_s11 }
  0x87   : > { %s908_s11 = smov %s778_s24  ;;  %s909_s12 = smov %s684_s13 }
  0x88   : > { %s887_s13 = smov 0   ;;  %s910_s14 = smov %s692_s15 }
  0x89   : > { %s911_s15 = smov %s913_s19  ;;  %20 = sbr.rel (!%p18_p8) target bundleno = 9 (0x9), region = 90 }
  0x90   :  { %331 = vsyncpa [#allocation3], 1 }
  0x91   :  { %333 = vsyncpa [#allocation3 + $0x1], 1 }
  0x92   :  { %334 = vsyncpa [#allocation6], 1 }
  0x93   :  { %336 = vsyncpa [#allocation6 + $0x1], 1 }
  0x94   :  { %337 = vsyncpa [#allocation4], 1 }
  0x95   :  { %339 = vsyncpa [#allocation4 + $0x1], 1 }

</bundles_post_ra>
